<compile_context>
chip_gen: v5e
topology: v5e:2x2
jax: 0.10.0
libtpu: 0.0.40
codegen_flags: <defaults>
</compile_context>

<pallas_src>
import functools

import jax
import jax.numpy as jnp
from jax.experimental import pallas as pl
from jax.experimental.pallas import tpu as pltpu

LANE = 128


def _round_up(x, m):
    return (x + m - 1) // m * m


# ---------------------------------------------------------------------------
# Pallas kernel: one SAGE layer reduced to  relu(inv_deg * (A_counts @ Z) + Y)
#   grid = (row tiles i, contraction tiles k)   -- k innermost, "arbitrary"
#   a_ref  : (tm, tk)      bf16 raw adjacency-count tile (dominant HBM stream)
#   z_ref  : (n_pad, F_out) bf16 neighbor-path features, fully VMEM-resident
#   inv_ref: (tm, 1)        f32 reciprocal in-degree rows
#   y_ref  : (tm, F_out)    f32 self path + bias rows
#   o_ref  : (tm, F_out)    f32 output block == resident accumulator (index map ignores k)
# ---------------------------------------------------------------------------
def _sage_agg_kernel(a_ref, z_ref, inv_ref, y_ref, o_ref, *, tk):
    k = pl.program_id(1)

    @pl.when(k == 0)
    def _():
        o_ref[...] = jnp.zeros_like(o_ref)

    start = pl.multiple_of(k * tk, 128)
    z_blk = z_ref[pl.ds(start, tk), :]                    # slice of the resident Z
    o_ref[...] += jnp.dot(a_ref[...], z_blk,
                          preferred_element_type=jnp.float32)

    @pl.when(k == pl.num_programs(1) - 1)
    def _():
        # Mean normalization + self path + fused ReLU in the epilogue.
        o_ref[...] = jnp.maximum(o_ref[...] * inv_ref[...] + y_ref[...], 0.0)


def _choose_tiles(n, tile_m, tile_k):
    """Pick (tm, tk, n_pad): tk a multiple of 128, tm a multiple of 16 dividing n_pad."""
    tk = _round_up(min(tile_k, _round_up(n, LANE)), LANE)
    n_pad = _round_up(n, tk)
    # Keep >= 4 row tiles where possible so the "parallel" row axis shards across
    # both v7x TensorCores with >= 2 tiles each.
    tm_cap = max(16, min(tile_m, max(16, n_pad // 4)))
    tm = 16
    for cand in range(tm_cap - tm_cap % 16, 15, -16):
        if n_pad % cand == 0:
            tm = cand
            break
    return tm, tk, n_pad


def sage_conv_relu(a_counts, inv_deg, x, w_l, w_r, b_l, *, tm, tk, n_pad):
    """relu( inv_deg * (A_counts @ (x @ w_l)) + x @ w_r + b_l ) for one SAGE layer.

    a_counts: [n_pad, n_pad] bf16 raw adjacency counts (row = destination node).
    inv_deg : [n_pad, 1]     f32 reciprocal in-degree.
    x       : [n, F_in]      f32 node features (un-padded).
    """
    n, _ = x.shape
    f_out = w_l.shape[1]

    # Tiny K=F_in pre-pass (left to XLA), padded to n_pad rows (O(n*F_out), cheap).
    z = jnp.dot(x, w_l).astype(jnp.bfloat16)               # neighbor path
    y = (jnp.dot(x, w_r) + b_l).astype(jnp.float32)        # self path + bias
    pad = n_pad - n
    if pad:
        z = jnp.pad(z, ((0, pad), (0, 0)))
        y = jnp.pad(y, ((0, pad), (0, 0)))

    # VMEM budget (lane-padded estimate): double-buffered A tiles dominate.
    f_pad = _round_up(f_out, LANE)
    vmem_bytes = (2 * tm * tk * 2            # A tiles (bf16, double buffered)
                  + 2 * n_pad * f_pad * 2    # resident Z (bf16, lane padded)
                  + 2 * tm * LANE * 4        # inv_deg tiles
                  + 4 * tm * f_pad * 4)      # Y + out tiles
    vmem_limit = int(min(vmem_bytes + (8 << 20), 48 << 20))  # headroom; fits v7x's 64 MiB

    out = pl.pallas_call(
        functools.partial(_sage_agg_kernel, tk=tk),
        out_shape=jax.ShapeDtypeStruct((n_pad, f_out), jnp.float32),
        grid=(n_pad // tm, n_pad // tk),
        in_specs=[
            pl.BlockSpec((tm, tk), lambda i, k: (i, k)),         # A row/col tile (bf16)
            pl.BlockSpec((n_pad, f_out), lambda i, k: (0, 0)),   # Z fully resident (bf16)
            pl.BlockSpec((tm, 1), lambda i, k: (i, 0)),          # inv_deg rows (f32)
            pl.BlockSpec((tm, f_out), lambda i, k: (i, 0)),      # Y rows (f32)
        ],
        out_specs=pl.BlockSpec((tm, f_out), lambda i, k: (i, 0)),
        compiler_params=pltpu.CompilerParams(
            dimension_semantics=("parallel", "arbitrary"),
            vmem_limit_bytes=vmem_limit),
    )(a_counts, z, inv_deg, y)
    return out[:n]


# ---------------------------------------------------------------------------
# Plain-JAX glue
# ---------------------------------------------------------------------------
def build_graph_operands(edge_index, n_pad):
    """Raw bf16 adjacency counts (built padded, no O(N^2) normalize/cast passes)
    plus f32 reciprocal in-degree from an O(E) edge-list segment-sum.
    PyG convention: edge_index[0]=source j, edge_index[1]=destination i (j -> i)."""
    src, dst = edge_index[0], edge_index[1]
    a_counts = jnp.zeros((n_pad, n_pad), jnp.bfloat16).at[dst, src].add(1.0)
    deg = jnp.zeros((n_pad,), jnp.float32).at[dst].add(1.0)
    inv_deg = (1.0 / jnp.maximum(deg, 1.0)).reshape(n_pad, 1)   # zero-deg rows aggregate to 0
    return a_counts, inv_deg


def init_params(key, num_table_rows, emb_dim, hid_dim):
    ks = jax.random.split(key, 8)

    def linear_w(k, fan_in, fan_out):
        bound = 1.0 / jnp.sqrt(fan_in)
        return jax.random.uniform(k, (fan_in, fan_out), jnp.float32, -bound, bound)

    def linear_b(k, fan_in, fan_out):
        bound = 1.0 / jnp.sqrt(fan_in)
        return jax.random.uniform(k, (1, fan_out), jnp.float32, -bound, bound)

    return {
        "emb_table": jax.random.normal(ks[0], (num_table_rows, emb_dim), jnp.float32),
        # SAGEConv1: lin_l (with bias) on aggregated neighbors, lin_r (no bias) on self.
        "w1_l": linear_w(ks[1], emb_dim, hid_dim),
        "b1_l": linear_b(ks[2], emb_dim, hid_dim),
        "w1_r": linear_w(ks[3], emb_dim, hid_dim),
        # SAGEConv2
        "w2_l": linear_w(ks[4], hid_dim, hid_dim),
        "b2_l": linear_b(ks[5], hid_dim, hid_dim),
        "w2_r": linear_w(ks[6], hid_dim, hid_dim),
        # predictor Linear(hid*2, 1) exists in __init__ but is unused by forward(); omitted.
    }


def gnn_recommender_forward(params, node_ids, edge_index, *, tile_m=512, tile_k=2048):
    # Defaults sized for the HBM-bound A stream (>= ~2 MiB of A per grid step).
    # v6e (128 MiB VMEM) can push tile_m=1024 / tile_k=8192; v5e is happy at these defaults.
    n = node_ids.shape[0]
    tm, tk, n_pad = _choose_tiles(n, tile_m, tile_k)

    h = jnp.take(params["emb_table"], node_ids, axis=0)            # [N, emb_dim]
    a_counts, inv_deg = build_graph_operands(edge_index, n_pad)

    h = sage_conv_relu(a_counts, inv_deg, h, params["w1_l"], params["w1_r"],
                       params["b1_l"], tm=tm, tk=tk, n_pad=n_pad)
    h = sage_conv_relu(a_counts, inv_deg, h, params["w2_l"], params["w2_r"],
                       params["b2_l"], tm=tm, tk=tk, n_pad=n_pad)
    return h                                                        # [N, hid_dim]


# ---------------------------------------------------------------------------
# Test
# ---------------------------------------------------------------------------
if __name__ == "__main__":
    NUM_TABLE_ROWS = 256   # embedding vocabulary
    EMB_DIM = 32
    HID_DIM = 32
    N_GRAPH_NODES = 128    # nodes in this mini-batch graph
    N_EDGES = 512

    key = jax.random.PRNGKey(0)
    k_param, k_ids, k_src, k_dst = jax.random.split(key, 4)

    params = init_params(k_param, NUM_TABLE_ROWS, EMB_DIM, HID_DIM)
    node_ids = jax.random.randint(k_ids, (N_GRAPH_NODES,), 0, NUM_TABLE_ROWS, jnp.int32)
    edge_index = jnp.stack([
        jax.random.randint(k_src, (N_EDGES,), 0, N_GRAPH_NODES, jnp.int32),
        jax.random.randint(k_dst, (N_EDGES,), 0, N_GRAPH_NODES, jnp.int32),
    ], axis=0)                                                      # [2, E]

    out = jax.jit(gnn_recommender_forward)(params, node_ids, edge_index)
    out = jax.block_until_ready(out)
    assert out.shape == (N_GRAPH_NODES, HID_DIM) and out.dtype == jnp.float32

    src, dst = edge_index[0], edge_index[1]

    # --- Reference 1: same reassociation + bf16 quantization (tight check) ---
    a16 = jnp.zeros((N_GRAPH_NODES, N_GRAPH_NODES), jnp.bfloat16).at[dst, src].add(1.0)
    deg = jnp.zeros((N_GRAPH_NODES,), jnp.float32).at[dst].add(1.0)
    inv = (1.0 / jnp.maximum(deg, 1.0)).reshape(-1, 1)

    def ref_layer_bf16(h, w_l, w_r, b):
        z16 = jnp.dot(h, w_l).astype(jnp.bfloat16)
        agg = jnp.dot(a16, z16, preferred_element_type=jnp.float32) * inv
        return jnp.maximum(agg + jnp.dot(h, w_r) + b, 0.0)

    h_q = jnp.take(params["emb_table"], node_ids, axis=0)
    h_q = ref_layer_bf16(h_q, params["w1_l"], params["w1_r"], params["b1_l"])
    h_q = ref_layer_bf16(h_q, params["w2_l"], params["w2_r"], params["b2_l"])
    assert jnp.allclose(out, h_q, atol=2e-3, rtol=2e-3)

    # --- Reference 2: pure fp32 module semantics (loose check, bf16 Z rounding) ---
    a32 = jnp.zeros((N_GRAPH_NODES, N_GRAPH_NODES), jnp.float32).at[dst, src].add(1.0)
    a32 = a32 / jnp.maximum(a32.sum(axis=-1, keepdims=True), 1.0)
    h_f = jnp.take(params["emb_table"], node_ids, axis=0)
    h_f = jnp.maximum(a32 @ h_f @ params["w1_l"] + h_f @ params["w1_r"] + params["b1_l"], 0.0)
    h_f = jnp.maximum(a32 @ h_f @ params["w2_l"] + h_f @ params["w2_r"] + params["b2_l"], 0.0)
    assert jnp.allclose(out, h_f, atol=5e-2, rtol=5e-2)

    print("KERNEL_OK")
</pallas_src>

<mosaic_0001>
module attributes {stable_mosaic.version = 11 : i64} {
  func.func @_sage_agg_kernel(%arg0: i32, %arg1: i32, %arg2: memref<32x128xbf16, #tpu.memory_space<vmem>>, %arg3: memref<128x32xbf16, #tpu.memory_space<vmem>>, %arg4: memref<32x1xf32, #tpu.memory_space<vmem>>, %arg5: memref<32x32xf32, #tpu.memory_space<vmem>>, %arg6: memref<32x32xf32, #tpu.memory_space<vmem>>) attributes {dimension_semantics = [#tpu.dimension_semantics<parallel>, #tpu.dimension_semantics<arbitrary>], iteration_bounds = array<i64: 4, 1>, scalar_prefetch = 0 : i64, scratch_operands = 0 : i64, tpu.core_type = #tpu.core_type<tc>, window_params = [{transform_indices = @transform_0, window_bounds = array<i64: 32, 128>}, {pipeline_mode = #tpu.pipeline_mode<synchronous>, transform_indices = @transform_1, window_bounds = array<i64: 128, 32>}, {transform_indices = @transform_2, window_bounds = array<i64: 32, 1>}, {transform_indices = @transform_3, window_bounds = array<i64: 32, 32>}, {transform_indices = @transform_4, window_bounds = array<i64: 32, 32>}]} {
    %c0_i32 = arith.constant 0 : i32
    %0 = arith.cmpi eq, %arg1, %c0_i32 : i32
    %1 = arith.extui %0 : i1 to i32
    %c0_i32_0 = arith.constant 0 : i32
    %2 = arith.cmpi ne, %1, %c0_i32_0 : i32
    scf.if %2 {
      %cst_9 = arith.constant 0.000000e+00 : f32
      %15 = vector.broadcast %cst_9 : f32 to vector<32x32xf32>
      %c0_10 = arith.constant 0 : index
      %c0_11 = arith.constant 0 : index
      %16 = vector.load %arg6[%c0_10, %c0_11] : memref<32x32xf32, #tpu.memory_space<vmem>>, vector<32x32xf32>
      tpu.vector_store %arg6[%c0_10, %c0_11], %15 {strides = array<i32>} : memref<32x32xf32, #tpu.memory_space<vmem>>, vector<32x32xf32>,
    } else {
    }
    %c128_i32 = arith.constant 128 : i32
    %3 = arith.muli %arg1, %c128_i32 : i32
    %4 = tpu.assume_multiple %3, 128 : i32
    %5 = arith.index_cast %4 : i32 to index
    %c0 = arith.constant 0 : index
    %6 = vector.load %arg3[%5, %c0] : memref<128x32xbf16, #tpu.memory_space<vmem>>, vector<128x32xbf16>
    %c0_1 = arith.constant 0 : index
    %c0_2 = arith.constant 0 : index
    %7 = vector.load %arg6[%c0_1, %c0_2] : memref<32x32xf32, #tpu.memory_space<vmem>>, vector<32x32xf32>
    %c0_3 = arith.constant 0 : index
    %c0_4 = arith.constant 0 : index
    %8 = vector.load %arg2[%c0_3, %c0_4] : memref<32x128xbf16, #tpu.memory_space<vmem>>, vector<32x128xbf16>
    %cst = arith.constant dense<0.000000e+00> : vector<32x32xf32>
    %9 = tpu.matmul %8, %6, %cst {dimension_numbers = #tpu.dot_dimension_numbers<[1], [0], [0], [1], [0, 0, 1, 1], [], []>} : vector<32x128xbf16>, vector<128x32xbf16>, vector<32x32xf32> -> vector<32x32xf32>
    %10 = arith.addf %7, %9 : vector<32x32xf32>
    %c0_5 = arith.constant 0 : index
    %c0_6 = arith.constant 0 : index
    %11 = vector.load %arg6[%c0_5, %c0_6] : memref<32x32xf32, #tpu.memory_space<vmem>>, vector<32x32xf32>
    tpu.vector_store %arg6[%c0_5, %c0_6], %10 {strides = array<i32>} : memref<32x32xf32, #tpu.memory_space<vmem>>, vector<32x32xf32>,
    %c0_i32_7 = arith.constant 0 : i32
    %12 = arith.cmpi eq, %arg1, %c0_i32_7 : i32
    %13 = arith.extui %12 : i1 to i32
    %c0_i32_8 = arith.constant 0 : i32
    %14 = arith.cmpi ne, %13, %c0_i32_8 : i32
    scf.if %14 {
      %c0_9 = arith.constant 0 : index
      %c0_10 = arith.constant 0 : index
      %15 = vector.load %arg6[%c0_9, %c0_10] : memref<32x32xf32, #tpu.memory_space<vmem>>, vector<32x32xf32>
      %c0_11 = arith.constant 0 : index
      %c0_12 = arith.constant 0 : index
      %16 = vector.load %arg4[%c0_11, %c0_12] : memref<32x1xf32, #tpu.memory_space<vmem>>, vector<32x1xf32>
      %17 = vector.broadcast %16 : vector<32x1xf32> to vector<32x32xf32>
      %18 = arith.mulf %15, %17 : vector<32x32xf32>
      %c0_13 = arith.constant 0 : index
      %c0_14 = arith.constant 0 : index
      %19 = vector.load %arg5[%c0_13, %c0_14] : memref<32x32xf32, #tpu.memory_space<vmem>>, vector<32x32xf32>
      %20 = arith.addf %18, %19 : vector<32x32xf32>
      %cst_15 = arith.constant 0.000000e+00 : f32
      %21 = vector.broadcast %cst_15 : f32 to vector<32x32xf32>
      %22 = arith.maximumf %20, %21 : vector<32x32xf32>
      %c0_16 = arith.constant 0 : index
      %c0_17 = arith.constant 0 : index
      %23 = vector.load %arg6[%c0_16, %c0_17] : memref<32x32xf32, #tpu.memory_space<vmem>>, vector<32x32xf32>
      tpu.vector_store %arg6[%c0_16, %c0_17], %22 {strides = array<i32>} : memref<32x32xf32, #tpu.memory_space<vmem>>, vector<32x32xf32>,
    } else {
    }
    return
  }
  func.func @transform_0(%arg0: i32, %arg1: i32) -> (i32, i32) {
    %c0_i32 = arith.constant 0 : i32
    return %arg0, %arg1 : i32, i32
  }
  func.func @transform_1(%arg0: i32, %arg1: i32) -> (i32, i32) {
    %c0_i32 = arith.constant 0 : i32
    %c0_i32_0 = arith.constant 0 : i32
    %c0_i32_1 = arith.constant 0 : i32
    return %c0_i32, %c0_i32_0 : i32, i32
  }
  func.func @transform_2(%arg0: i32, %arg1: i32) -> (i32, i32) {
    %c0_i32 = arith.constant 0 : i32
    %c0_i32_0 = arith.constant 0 : i32
    return %arg0, %c0_i32 : i32, i32
  }
  func.func @transform_3(%arg0: i32, %arg1: i32) -> (i32, i32) {
    %c0_i32 = arith.constant 0 : i32
    %c0_i32_0 = arith.constant 0 : i32
    return %arg0, %c0_i32 : i32, i32
  }
  func.func @transform_4(%arg0: i32, %arg1: i32) -> (i32, i32) {
    %c0_i32 = arith.constant 0 : i32
    %c0_i32_0 = arith.constant 0 : i32
    return %arg0, %c0_i32 : i32, i32
  }
}

</mosaic_0001>

<bundles_post_ra>
// kernel: gnn_recommender_forward.2
= control target key start
LH: loop header
LB: loop body
LE: loop exit
PB: predicated region body
PF: predicated region fallthrough
CT: control target
= control target key end

     0   :  { %s691_s15 = smov 0   ;;  %s693_s16 = smov 0   ;;  %s797_s0 = inlined_call_operand.vmem [shape: bf16[128,128], index: 0, kind: input, shape index: {}]   ;;  %s798_s1 = inlined_call_operand.vmem [shape: bf16[128,32], index: 1, kind: input, shape index: {}]   ;;  %s799_s2 = inlined_call_operand.vmem [shape: f32[128,1], index: 2, kind: input, shape index: {}]   ;;  %s800_s3 = inlined_call_operand.vmem [shape: f32[128,32], index: 3, kind: input, shape index: {}]   ;;  %s801_s4 = inlined_call_operand.vmem [shape: f32[128,32], index: 4, kind: output, shape index: {}]  }
   0x1   :  { %s695_s17 = smov 0  }
   0x2 LB: > { %s26_s18 = sadd.s32 1, %s658_s16  ;;  %p543_p0 = scmp.ge.s32.totalorder %s662_s17, 1  ;;  %s662_s17 = sphi %s695_s17, %s14_s17   ;;  %s658_s16 = sphi %s693_s16, %s803_s16   ;;  %s654_s15 = sphi %s691_s15, %s802_s15  }
   0x3   : > { %p28_p1 = scmp.ge.s32.totalorder %s26_s18, 4  ;;  %p202_p2 = scmp.lt.s32.totalorder %s662_s17, 5 }
   0x5   : > { %s805_s18 = smov (%p28_p1, %s26_s18), 0  ;;  %p203_p3 = pnand %p543_p0, %p202_p2 }
   0x6   : > { %s544_s21 = sshll.u32 (!%p203_p3), %s654_s15, 2 }
   0x7   : > { %206 = sbr.rel (%p203_p3) target bundleno = 196 (0xc4), region = 36  ;;  %p242_p4 = scmp.lt.s32.totalorder (!%p203_p3), %s544_s21, 15 }
   0xc   : > { %v601_v0 = vld [vmem:[%s798_s1 + $0x38] sm:$0xff]  ;;  %v600_v1 = vld [vmem:[%s798_s1 + $0x30] sm:$0xff]  ;;  %s807_s21 = smov (!%p242_p4, %s544_s21), 15  ;;  %v664_v2 = vmov 0   ;;  %vm272_vm0 = vcmask 261120   ;;  %v599_v3 = vld [vmem:[%s798_s1 + $0x28] sm:$0xff] }
   0xd   : > { %366 = vmatpush.bf16.msra.mxu0 %v601_v0  ;;  %604 = vmatpush.bf16.msra.mxu1 %v601_v0  ;;  %s718_s24 = sshll.u32 %s807_s21, 3  ;;  %v665_v6 = vmov 0.0   ;;  %v598_v7 = vld [vmem:[%s798_s1 + $0x20] sm:$0xff]  ;;  %v597_v9 = vld [vmem:[%s798_s1 + $0x18] sm:$0xff]  ;;  %v596_v11 = vld [vmem:[%s798_s1 + $0x10] sm:$0xff]  ;;  %s545_s15 = sshll.u32 %s807_s21, 2 }
   0xe   : > { %639 = vset.pattern.permute.xlu1 %v664_v2  ;;  %638 = vset.pattern.permute.xlu0 %v664_v2  ;;  %s254_s29 = scalar_lea.vmem %s799_s2, %s718_s24  ;;  %s731_s6 = scalar_lea.vmem %s801_s4, %s718_s24  ;;  %v595_v12 = vld [vmem:[%s798_s1 + $0x8] sm:$0xff]  ;;  %v594_v13 = vld [vmem:[%s798_s1] sm:$0xff] }
   0xf   : > { %v403_v4 = vld [vmem:[%s254_s29 + $0x10] sm:$0xff]  ;;  %v401_v5 = vld [vmem:[%s254_s29] sm:$0xff]  ;;  %273 = vst.msk [vmem:[%s731_s6] sm:$0xff] %vm272_vm0, %v665_v6  ;;  %v404_v8 = vld [vmem:[%s254_s29 + $0x18] sm:$0xff]  ;;  %s248_s25 = scalar_lea.vmem %s797_s0, %s545_s15  ;;  %s260_s27 = scalar_lea.vmem %s800_s3, %s718_s24 }
  0x10   : > { %417 = vperm.xlu1 %639, %v403_v4   ;;  %407 = vperm.xlu0 %638, %v401_v5   ;;  %274 = vst.msk [vmem:[%s731_s6 + $0x8] sm:$0xff] %vm272_vm0, %v665_v6  ;;  %v402_v10 = vld [vmem:[%s254_s29 + $0x8] sm:$0xff]  ;;  %v602_v14 = vld [vmem:[%s248_s25] sm:$0xff]  ;;  %v431_v32 = vld [vmem:[%s260_s27 + $0x10] sm:$0xff] }
  0x11   : > { %367 = vmatpush.bf16.msra.mxu0 %v600_v1  ;;  %605 = vmatpush.bf16.msra.mxu1 %v600_v1  ;;  %275 = vst.msk [vmem:[%s731_s6 + $0x10] sm:$0xff] %vm272_vm0, %v665_v6  ;;  %v603_v15 = vld [vmem:[%s248_s25 + $0x8] sm:$0xff]  ;;  %v429_v30 = vld [vmem:[%s260_s27] sm:$0xff]  ;;  %v432_v43 = vld [vmem:[%s260_s27 + $0x18] sm:$0xff] }
  0x12   : > { %276 = vst.msk [vmem:[%s731_s6 + $0x18] sm:$0xff] %vm272_vm0, %v665_v6  ;;  %v430_v40 = vld [vmem:[%s260_s27 + $0x8] sm:$0xff] }
  0x15   : > { %368 = vmatpush.bf16.msra.mxu0 %v599_v3  ;;  %606 = vmatpush.bf16.msra.mxu1 %v599_v3 }
  0x16   : > { %v298_v16 = vld [vmem:[%s731_s6] sm:$0xff] }
  0x17   : > { %v299_v22 = vld [vmem:[%s731_s6 + $0x8] sm:$0xff] }
  0x18   : > { %422 = vperm.xlu1 %639, %v404_v8   ;;  %412 = vperm.xlu0 %638, %v402_v10   ;;  %v300_v17 = vld [vmem:[%s731_s6 + $0x10] sm:$0xff] }
  0x19   : > { %369 = vmatpush.bf16.msra.mxu0 %v598_v7  ;;  %607 = vmatpush.bf16.msra.mxu1 %v598_v7  ;;  %v301_v23 = vld [vmem:[%s731_s6 + $0x18] sm:$0xff] }
  0x1d   : > { %370 = vmatpush.bf16.msra.mxu0 %v597_v9  ;;  %608 = vmatpush.bf16.msra.mxu1 %v597_v9 }
  0x21   : > { %371 = vmatpush.bf16.msra.mxu0 %v596_v11  ;;  %609 = vmatpush.bf16.msra.mxu1 %v596_v11 }
  0x25   : > { %372 = vmatpush.bf16.msra.mxu0 %v595_v12  ;;  %610 = vmatpush.bf16.msra.mxu1 %v595_v12 }
  0x29   : > { %373 = vmatpush.bf16.msra.mxu0 %v594_v13  ;;  %611 = vmatpush.bf16.msra.mxu1 %v594_v13 }
  0x2c   : > { %374 = vmatmul.bf16.vlgmr.msra.gmra.mxu0 %v602_v14  ;;  %379 = vmatmul.bf16.vlgmr.msra.gmra.mxu1 %v603_v15 }
  0x82   : > { %v408_v24 = vpop.permute.xlu0 %407  ;;  %v418_v27 = vpop.permute.xlu1 %417 }
  0x8a   : > { %v413_v41 = vpop.permute.xlu0 %412  ;;  %v423_v44 = vpop.permute.xlu1 %422 }
  0xa9   : > { %v375_v18 = vpop.f32.mrf.mxu0  ;;  %v380_v19 = vpop.f32.mrf.mxu1 }
  0xaa   : > { %v385_v20 = vadd.f32 %v375_v18, %v298_v16  ;;  %v387_v21 = vadd.f32 %v380_v19, %v300_v17 }
  0xac   : > { %390 = vst.msk [vmem:[%s731_s6] sm:$0xff] %vm272_vm0, %v385_v20 }
  0xad   : > { %392 = vst.msk [vmem:[%s731_s6 + $0x10] sm:$0xff] %vm272_vm0, %v387_v21 }
  0xb1   : > { %v377_v25 = vpop.f32.mrf.mxu0  ;;  %v382_v26 = vpop.f32.mrf.mxu1 }
  0xb2   : > { %v386_v28 = vadd.f32 %v377_v25, %v299_v22  ;;  %v388_v29 = vadd.f32 %v382_v26, %v301_v23 }
  0xb3   : > { %v397_v31 = vld [vmem:[%s731_s6] sm:$0xff] }
  0xb4   : > { %v399_v33 = vld [vmem:[%s731_s6 + $0x10] sm:$0xff]  ;;  %v425_v34 = vmul.f32 %v408_v24, %v397_v31  ;;  %391 = vst.msk [vmem:[%s731_s6 + $0x8] sm:$0xff] %vm272_vm0, %v386_v28 }
  0xb5   : > { %v427_v35 = vmul.f32 %v418_v27, %v399_v33  ;;  %393 = vst.msk [vmem:[%s731_s6 + $0x18] sm:$0xff] %vm272_vm0, %v388_v29 }
  0xb6   : > { %v433_v36 = vadd.f32 %v429_v30, %v425_v34 }
  0xb7   : > { %v435_v37 = vadd.f32 %v431_v32, %v427_v35 }
  0xb8   : > { %v437_v38 = vmax.f32 %v433_v36, 0.0 }
  0xb9   : > { %v439_v39 = vmax.f32 %v435_v37, 0.0 }
  0xba   : > { %441 = vst.msk [vmem:[%s731_s6] sm:$0xff] %vm272_vm0, %v437_v38 }
  0xbb   : > { %443 = vst.msk [vmem:[%s731_s6 + $0x10] sm:$0xff] %vm272_vm0, %v439_v39  ;;  %v398_v42 = vld [vmem:[%s731_s6 + $0x8] sm:$0xff] }
  0xbc   : > { %v400_v45 = vld [vmem:[%s731_s6 + $0x18] sm:$0xff]  ;;  %v426_v46 = vmul.f32 %v413_v41, %v398_v42 }
  0xbd   : > { %v428_v47 = vmul.f32 %v423_v44, %v400_v45 }
  0xbe   : > { %v434_v48 = vadd.f32 %v430_v40, %v426_v46 }
  0xbf   : > { %v436_v49 = vadd.f32 %v432_v43, %v428_v47 }
  0xc0   : > { %v438_v50 = vmax.f32 %v434_v48, 0.0 }
  0xc1   : > { %v440_v51 = vmax.f32 %v436_v49, 0.0 }
  0xc2   : > { %442 = vst.msk [vmem:[%s731_s6 + $0x8] sm:$0xff] %vm272_vm0, %v438_v50 }
  0xc3   : > { %444 = vst.msk [vmem:[%s731_s6 + $0x18] sm:$0xff] %vm272_vm0, %v440_v51 }
  0xc4 PF: > { %s14_s17 = sadd.s32 1, %s662_s17   ;;  %s802_s15 = smov %s658_s16 }
  0xc5   : > { %p11_p5 = scmp.ge.s32.totalorder %s14_s17, 6   ;;  %s803_s16 = smov %s805_s18 }
  0xc7   :  { %13 = sbr.rel (!%p11_p5) target bundleno = 2 (0x2), region = 81 }

</bundles_post_ra>
